<compile_context>
chip_gen: v6e
topology: v6e:2x2x1
jax: 0.10.0
libtpu: 0.0.40
codegen_flags: <defaults>
</compile_context>

<pallas_src>
import jax
import jax.numpy as jnp
from jax.experimental import pallas as pl
from jax.experimental.pallas import tpu as pltpu


_SUB_ALIGN = {4: 8, 2: 16, 1: 32}   # sublane alignment by itemsize


def _round_up(x, m):
    return (x + m - 1) // m * m


def _divisor_tile(total, desired, unit=128):
    """Largest multiple of `unit` dividing `total` (a multiple of `unit`) that
    is <= `desired` (returns at least `unit`)."""
    q = total // unit
    desired_q = max(1, desired // unit)
    best = 1
    d = 1
    while d * d <= q:
        if q % d == 0:
            for c in (d, q // d):
                if c <= desired_q and c > best:
                    best = c
        d += 1
    return best * unit


def _device_kind():
    try:
        return jax.devices()[0].device_kind.lower()
    except Exception:
        return ""


def _vmem_capacity_bytes():
    try:
        cap = getattr(pltpu.get_tpu_info(), "vmem_capacity_bytes", None)
        if cap:
            return int(cap)
    except Exception:
        pass
    kind = _device_kind()
    return (64 << 20) if "v7" in kind else (128 << 20)


def _vmem_estimate(tm, tn, tk, isz, osz, w_bufs):
    return (2 * tm * tk * isz            # x tile, double-buffered
            + w_bufs * tk * tn * isz     # W column stripe(s)
            + 2 * 8 * tn * 4             # bias stripe (sublane-padded)
            + 2 * tm * tn * osz          # output tile, double-buffered
            + tm * tn * 4)               # f32 accumulator scratch


# ---------------------------------------------------------------------------
# Kernel
# ---------------------------------------------------------------------------
def _cache_layer_kernel(x_ref, w_ref, b_ref, o_ref, acc_ref):
    """acts = relu(x @ W + b), K-tiled with an f32 accumulator scratch."""
    k = pl.program_id(2)

    @pl.when(k == 0)
    def _():
        acc_ref[...] = jnp.zeros_like(acc_ref)

    acc_ref[...] += jnp.dot(
        x_ref[...], w_ref[...], preferred_element_type=jnp.float32
    )

    @pl.when(k == pl.num_programs(2) - 1)
    def _():
        acts = acc_ref[...] + b_ref[...].astype(jnp.float32)   # (1, tn) broadcasts
        o_ref[...] = jnp.maximum(acts, 0.0).astype(o_ref.dtype)


# ---------------------------------------------------------------------------
# Weight preparation (done once, not per forward)
# ---------------------------------------------------------------------------
class _PreparedWeights:
    __slots__ = ("Wc", "b2", "d_in", "d_out", "Kp", "Np",
                 "tn", "tk", "tm_ub", "cdt", "w_bufs", "budget")


def prepare_cache_layer_weights(W, b, *, compute_dtype=jnp.bfloat16,
                                desired_tm=None, desired_tn=None,
                                desired_tk=None):
    """Cast/pad W and b once and pick chip-aware tile sizes."""
    d_in, d_out = W.shape
    cdt = (jnp.dtype(compute_dtype) if compute_dtype is not None
           else jnp.dtype(W.dtype))
    isz = cdt.itemsize

    vmem_cap = _vmem_capacity_bytes()
    kind = _device_kind()
    is_v5e = ("v5e" in kind) or ("v5 lite" in kind) or ("v5litepod" in kind)
    # Deeper W-stripe prefetch on v5e (slow ~0.8 TB/s HBM).
    w_bufs = 3 if is_v5e else 2

    if vmem_cap <= (64 << 20):        # v7x: 64 MiB/TC -> stay well under
        budget = 44 << 20
        dm, dn, dk = 256, 512, 2048
    else:                             # v5e / v6e: 128 MiB VMEM -> big tiles
        budget = 96 << 20
        dm, dn, dk = 512, 1024, 8192
    desired_tm = desired_tm or dm
    desired_tn = desired_tn or dn
    desired_tk = desired_tk or dk

    Kp = _round_up(d_in, 128)
    Np = _round_up(d_out, 128)

    # Divisor tiles -> exact grid; tk = full K whenever it fits so each W
    # stripe is read from HBM exactly once.
    tn = _divisor_tile(Np, min(desired_tn, Np))
    tk = _divisor_tile(Kp, min(desired_tk, Kp))
    tm_ub = desired_tm

    while _vmem_estimate(tm_ub, tn, tk, isz, 4, w_bufs) > budget:
        if tk > 128:
            new_tk = _divisor_tile(Kp, tk // 2)
            if new_tk < tk:
                tk = new_tk
                continue
        if tn > 128:
            new_tn = _divisor_tile(Np, tn // 2)
            if new_tn < tn:
                tn = new_tn
                continue
        if tm_ub > 64:
            tm_ub //= 2
            continue
        break

    Wc = W.astype(cdt)
    if (Kp, Np) != (d_in, d_out):
        Wc = jnp.pad(Wc, ((0, Kp - d_in), (0, Np - d_out)))
    b2 = jnp.reshape(b, (1, -1)).astype(jnp.float32)
    if Np != d_out:
        b2 = jnp.pad(b2, ((0, 0), (0, Np - d_out)))

    prep = _PreparedWeights()
    prep.Wc, prep.b2 = Wc, b2
    prep.d_in, prep.d_out = d_in, d_out
    prep.Kp, prep.Np = Kp, Np
    prep.tn, prep.tk, prep.tm_ub = tn, tk, tm_ub
    prep.cdt, prep.w_bufs, prep.budget = cdt, w_bufs, budget
    return prep


# ---------------------------------------------------------------------------
# Forward (per-call work: x cast/pad + pallas_call)
# ---------------------------------------------------------------------------
def _forward_prepared(x, prep, out_dtype=None):
    d_in, d_out = prep.d_in, prep.d_out
    assert x.shape[-1] == d_in, "x / W inner dims must match"
    lead = x.shape[:-1]
    x2 = x.reshape((-1, d_in))
    batch = x2.shape[0]

    odt = jnp.dtype(out_dtype) if out_dtype is not None else jnp.dtype(x.dtype)
    cdt = prep.cdt
    sub_align = max(_SUB_ALIGN[cdt.itemsize], _SUB_ALIGN[odt.itemsize])

    tm = min(prep.tm_ub, _round_up(batch, sub_align))
    tm = _round_up(tm, sub_align)
    Mp = _round_up(batch, tm)
    Kp, Np, tk, tn = prep.Kp, prep.Np, prep.tk, prep.tn

    xc = x2.astype(cdt)
    if (Mp, Kp) != (batch, d_in):
        xc = jnp.pad(xc, ((0, Mp - batch), (0, Kp - d_in)))

    # N outer, M (batch) middle, K innermost (reduction). With tk == Kp the W
    # stripe's block index depends only on j, so it stays VMEM-resident while
    # batch tiles stream.
    grid = (Np // tn, Mp // tm, Kp // tk)

    isz, osz = cdt.itemsize, odt.itemsize
    est = _vmem_estimate(tm, tn, tk, isz, osz, prep.w_bufs)
    vmem_limit = int(min(prep.budget, max(2 * est, 32 << 20)))

    cost = pl.CostEstimate(
        flops=2 * Mp * Np * Kp,
        transcendentals=0,
        bytes_accessed=Mp * Kp * isz + Kp * Np * isz + Np * 4 + Mp * Np * osz,
    )

    w_spec = pl.BlockSpec((tk, tn), lambda j, i, k: (k, j))
    if prep.w_bufs > 2:
        try:   # v5e: 3-deep W prefetch hides the stripe DMA at j boundaries
            w_spec = pl.BlockSpec((tk, tn), lambda j, i, k: (k, j),
                                  pipeline_mode=pl.Buffered(prep.w_bufs))
        except TypeError:
            pass

    out = pl.pallas_call(
        _cache_layer_kernel,
        out_shape=jax.ShapeDtypeStruct((Mp, Np), odt),
        grid_spec=pltpu.PrefetchScalarGridSpec(
            num_scalar_prefetch=0,
            grid=grid,
            in_specs=[
                pl.BlockSpec((tm, tk), lambda j, i, k: (i, k)),   # x tile
                w_spec,                                           # W stripe
                pl.BlockSpec((1, tn), lambda j, i, k: (0, j)),    # bias stripe
            ],
            out_specs=pl.BlockSpec((tm, tn), lambda j, i, k: (i, j)),
            scratch_shapes=[pltpu.VMEM((tm, tn), jnp.float32)],
        ),
        compiler_params=pltpu.CompilerParams(
            dimension_semantics=("parallel", "parallel", "arbitrary"),
            vmem_limit_bytes=vmem_limit,
        ),
        cost_estimate=cost,
    )(xc, prep.Wc, prep.b2)

    if (Mp, Np) != (batch, d_out):          # no-op for 128-multiple SAE widths
        out = out[:batch, :d_out]
    return out.reshape(lead + (d_out,))


def cache_layer_forward(x, W, b, *, compute_dtype=jnp.bfloat16, out_dtype=None):
    """One-off convenience wrapper: relu(x @ W + b)."""
    prep = prepare_cache_layer_weights(W, b, compute_dtype=compute_dtype)
    return _forward_prepared(x, prep, out_dtype=out_dtype)


# ---------------------------------------------------------------------------
# saeco-style module wrappers (Python-side cache bookkeeping, no tensor work)
# ---------------------------------------------------------------------------
class Cache(dict):
    def clone(self):
        return type(self)(self)


class ActsCache(Cache):
    """Minimal stand-in for saeco's ActsCache (stores `acts`)."""
    pass


class CacheLayer:
    """relu(x @ W + b); writes cache['acts']. Weights prepared once."""

    def __init__(self, W, b, *, compute_dtype=jnp.bfloat16, out_dtype=None):
        self._prep = prepare_cache_layer_weights(W, b, compute_dtype=compute_dtype)
        self.out_dtype = out_dtype

    def __call__(self, x, *, cache=None):
        acts = _forward_prepared(x, self._prep, out_dtype=self.out_dtype)
        if cache is not None:
            cache["acts"] = acts
        return acts


class CacheProcLayer:
    """JAX/Pallas port of CacheProcLayer wrapping a linear+ReLU CacheLayer."""

    def __init__(self, cachelayer, train_cache=None, eval_cache=None):
        self.cachelayer = cachelayer
        self.train_cache_template = train_cache if train_cache is not None else ActsCache()
        self.eval_cache_template = eval_cache if eval_cache is not None else Cache()
        self.train_process_after_call = set()
        self.eval_process_after_call = set()
        self.training = True

    def generate_default_cache(self):
        tmpl = self.train_cache_template if self.training else self.eval_cache_template
        return tmpl.clone()

    def prepare_cache(self, cache=None):
        # TODO(synk): `box` registration / external-cache merging from saeco is
        # Python bookkeeping with no tensor compute; simplified here.
        return cache if cache is not None else self.generate_default_cache()

    def _update(self, cache):
        fns = (self.train_process_after_call if self.training
               else self.eval_process_after_call)
        for fn in fns:
            fn(cache)

    def forward(self, x, *, cache=None):
        cache = self.prepare_cache(cache)
        acts = self.cachelayer(*x, cache=cache)
        self._update(cache)
        return acts


# ---------------------------------------------------------------------------
if __name__ == "__main__":
    key = jax.random.PRNGKey(0)
    kx, kw, kb = jax.random.split(key, 3)

    # Deliberately non-aligned small shapes to exercise the padding path.
    batch, d_in, d_out = 20, 48, 200
    x = jax.random.normal(kx, (batch, d_in), dtype=jnp.float32)
    W = jax.random.normal(kw, (d_in, d_out), dtype=jnp.float32) * (1.0 / d_in ** 0.5)
    b = jax.random.normal(kb, (d_out,), dtype=jnp.float32) * 0.01

    ref = jnp.maximum(x @ W + b, 0.0)

    # 1) Strict f32 path.
    acts_f32 = jax.block_until_ready(
        cache_layer_forward(x, W, b, compute_dtype=jnp.float32))
    assert acts_f32.shape == (batch, d_out) and acts_f32.dtype == jnp.float32
    assert jnp.allclose(acts_f32, ref, atol=1e-5, rtol=1e-5)

    # 2) Default fast path (bf16 operands, f32 accumulation) through the full
    #    CacheProcLayer wrapper, with prepared/cached weights and a hook.
    layer = CacheProcLayer(CacheLayer(W, b))
    seen = []
    layer.train_process_after_call.add(lambda c: seen.append(c["acts"].shape))
    cache = ActsCache()
    acts = jax.block_until_ready(layer.forward((x,), cache=cache))
    assert acts.shape == (batch, d_out)
    assert jnp.allclose(acts.astype(jnp.float32), ref, atol=5e-2, rtol=5e-2)
    assert cache["acts"] is acts
    assert seen == [(batch, d_out)]

    # 3) bf16 activation output (HBM-write-light path).
    acts_bf = jax.block_until_ready(
        cache_layer_forward(x, W, b, out_dtype=jnp.bfloat16))
    assert acts_bf.shape == (batch, d_out) and acts_bf.dtype == jnp.bfloat16
    assert jnp.allclose(acts_bf.astype(jnp.float32), ref, atol=6e-2, rtol=6e-2)

    print("KERNEL_OK")
</pallas_src>

<mosaic_0001>
module attributes {stable_mosaic.version = 11 : i64} {
  func.func @_cache_layer_kernel(%arg0: i32, %arg1: i32, %arg2: i32, %arg3: memref<24x128xf32, #tpu.memory_space<vmem>>, %arg4: memref<128x256xf32, #tpu.memory_space<vmem>>, %arg5: memref<1x256xf32, #tpu.memory_space<vmem>>, %arg6: memref<24x256xf32, #tpu.memory_space<vmem>>, %arg7: memref<24x256xf32, #tpu.memory_space<vmem>>) attributes {dimension_semantics = [#tpu.dimension_semantics<parallel>, #tpu.dimension_semantics<parallel>, #tpu.dimension_semantics<arbitrary>], iteration_bounds = array<i64: 1, 1, 1>, scalar_prefetch = 0 : i64, scratch_operands = 1 : i64, tpu.core_type = #tpu.core_type<tc>, window_params = [{transform_indices = @transform_0, window_bounds = array<i64: 24, 128>}, {transform_indices = @transform_1, window_bounds = array<i64: 128, 256>}, {transform_indices = @transform_2, window_bounds = array<i64: 1, 256>}, {transform_indices = @transform_3, window_bounds = array<i64: 24, 256>}]} {
    %c0_i32 = arith.constant 0 : i32
    %0 = arith.cmpi eq, %arg2, %c0_i32 : i32
    %1 = arith.extui %0 : i1 to i32
    %c0_i32_0 = arith.constant 0 : i32
    %2 = arith.cmpi ne, %1, %c0_i32_0 : i32
    scf.if %2 {
      %cst_10 = arith.constant 0.000000e+00 : f32
      %12 = vector.broadcast %cst_10 : f32 to vector<24x256xf32>
      %c0_11 = arith.constant 0 : index
      %c0_12 = arith.constant 0 : index
      %13 = vector.load %arg7[%c0_11, %c0_12] : memref<24x256xf32, #tpu.memory_space<vmem>>, vector<24x256xf32>
      tpu.vector_store %arg7[%c0_11, %c0_12], %12 {strides = array<i32>} : memref<24x256xf32, #tpu.memory_space<vmem>>, vector<24x256xf32>,
    } else {
    }
    %c0 = arith.constant 0 : index
    %c0_1 = arith.constant 0 : index
    %3 = vector.load %arg7[%c0, %c0_1] : memref<24x256xf32, #tpu.memory_space<vmem>>, vector<24x256xf32>
    %c0_2 = arith.constant 0 : index
    %c0_3 = arith.constant 0 : index
    %4 = vector.load %arg3[%c0_2, %c0_3] : memref<24x128xf32, #tpu.memory_space<vmem>>, vector<24x128xf32>
    %c0_4 = arith.constant 0 : index
    %c0_5 = arith.constant 0 : index
    %5 = vector.load %arg4[%c0_4, %c0_5] : memref<128x256xf32, #tpu.memory_space<vmem>>, vector<128x256xf32>
    %cst = arith.constant dense<0.000000e+00> : vector<24x256xf32>
    %6 = tpu.matmul %4, %5, %cst {dimension_numbers = #tpu.dot_dimension_numbers<[1], [0], [0], [1], [0, 0, 1, 1], [], []>} : vector<24x128xf32>, vector<128x256xf32>, vector<24x256xf32> -> vector<24x256xf32>
    %7 = arith.addf %3, %6 : vector<24x256xf32>
    %c0_6 = arith.constant 0 : index
    %c0_7 = arith.constant 0 : index
    %8 = vector.load %arg7[%c0_6, %c0_7] : memref<24x256xf32, #tpu.memory_space<vmem>>, vector<24x256xf32>
    tpu.vector_store %arg7[%c0_6, %c0_7], %7 {strides = array<i32>} : memref<24x256xf32, #tpu.memory_space<vmem>>, vector<24x256xf32>,
    %c0_i32_8 = arith.constant 0 : i32
    %9 = arith.cmpi eq, %arg2, %c0_i32_8 : i32
    %10 = arith.extui %9 : i1 to i32
    %c0_i32_9 = arith.constant 0 : i32
    %11 = arith.cmpi ne, %10, %c0_i32_9 : i32
    scf.if %11 {
      %c0_10 = arith.constant 0 : index
      %c0_11 = arith.constant 0 : index
      %12 = vector.load %arg7[%c0_10, %c0_11] : memref<24x256xf32, #tpu.memory_space<vmem>>, vector<24x256xf32>
      %c0_12 = arith.constant 0 : index
      %c0_13 = arith.constant 0 : index
      %13 = vector.load %arg5[%c0_12, %c0_13] : memref<1x256xf32, #tpu.memory_space<vmem>>, vector<1x256xf32>
      %14 = vector.broadcast %13 : vector<1x256xf32> to vector<24x256xf32>
      %15 = arith.addf %12, %14 : vector<24x256xf32>
      %cst_14 = arith.constant 0.000000e+00 : f32
      %16 = vector.broadcast %cst_14 : f32 to vector<24x256xf32>
      %17 = arith.maximumf %15, %16 : vector<24x256xf32>
      %c0_15 = arith.constant 0 : index
      %c0_16 = arith.constant 0 : index
      %18 = vector.load %arg6[%c0_15, %c0_16] : memref<24x256xf32, #tpu.memory_space<vmem>>, vector<24x256xf32>
      tpu.vector_store %arg6[%c0_15, %c0_16], %17 {strides = array<i32>} : memref<24x256xf32, #tpu.memory_space<vmem>>, vector<24x256xf32>,
    } else {
    }
    return
  }
  func.func @transform_0(%arg0: i32, %arg1: i32, %arg2: i32) -> (i32, i32) {
    %c0_i32 = arith.constant 0 : i32
    return %arg1, %arg2 : i32, i32
  }
  func.func @transform_1(%arg0: i32, %arg1: i32, %arg2: i32) -> (i32, i32) {
    %c0_i32 = arith.constant 0 : i32
    return %arg2, %arg0 : i32, i32
  }
  func.func @transform_2(%arg0: i32, %arg1: i32, %arg2: i32) -> (i32, i32) {
    %c0_i32 = arith.constant 0 : i32
    %c0_i32_0 = arith.constant 0 : i32
    return %c0_i32, %arg0 : i32, i32
  }
  func.func @transform_3(%arg0: i32, %arg1: i32, %arg2: i32) -> (i32, i32) {
    %c0_i32 = arith.constant 0 : i32
    return %arg1, %arg0 : i32, i32
  }
}

</mosaic_0001>

<bundles_post_ra>
// kernel: tpu_custom_call.1
= control target key start
LH: loop header
LB: loop body
LE: loop exit
PB: predicated region body
PF: predicated region fallthrough
CT: control target
= control target key end

     0   :  { %8 = vsyncpa [#allocation4], 0  ;;  %s401_s0 = inlined_call_operand.hbm [shape: f32[24,128], index: 0, kind: input, shape index: {}]   ;;  %s402_s1 = inlined_call_operand.hbm [shape: f32[128,256], index: 1, kind: input, shape index: {}]   ;;  %s403_s2 = inlined_call_operand.vmem [shape: f32[1,256], index: 2, kind: input, shape index: {}]   ;;  %s404_s3 = inlined_call_operand.hbm [shape: f32[24,256], index: 3, kind: output, shape index: {}]  }
   0x1   :  { %9 = vsyncpa [#allocation7], 0 }
   0x2   :  { %10 = vsyncpa [#allocation5], 0  ;;  %s352_s12 = smov [#allocation3]  }
   0x3   :  { %s16_s13 = sshll.u32 %s352_s12, 4  ;;  %s17_s13 = int_to_ptr.vmem [resolvable:$true] %s16_s13 }
   0x4   :  { %s294_s14 = scalar_lea.vmem %s17_s13, 384  ;;  %p299_p1 = scmp.lt.s32.totalorder %s17_s13, %s17_s13 }
   0x5   :  { %p295_p0 = scmp.ne.s32.totalorder %s17_s13, %s294_s14  ;;  %p300_p2 = scmp.lt.s32.totalorder %s294_s14, %s294_s14 }
   0x7   :  { %p301_p3 = por %p300_p2, %p299_p1 }
   0x9   :  { %p302_p4 = pnand %p301_p3, %p295_p0 }
   0xb   :  { %305 = shalt.err (!%p302_p4)
}
   0xc   :  { %s353_s15 = smov 128   ;;  %s354_s16 = smov 8  }
   0xd   :  { %22 = dma.hbm_to_vmem [thread:$0]  %s401_s0, 384, %s17_s13, [#allocation4], %s353_s15, %s353_s15, %s354_s16  }
   0xe   :  { %s355_s19 = smov [#allocation6]  }
   0xf   :  { %s28_s20 = sshll.u32 %s355_s19, 4  ;;  %s29_s20 = int_to_ptr.vmem [resolvable:$true] %s28_s20 }
  0x10   :  { %s314_s21 = scalar_lea.vmem %s29_s20, 4096  ;;  %p319_p6 = scmp.lt.s32.totalorder %s29_s20, %s29_s20 }
  0x11   :  { %p315_p5 = scmp.ne.s32.totalorder %s29_s20, %s314_s21  ;;  %p320_p7 = scmp.lt.s32.totalorder %s314_s21, %s314_s21 }
  0x13   :  { %p321_p8 = por %p320_p7, %p319_p6 }
  0x15   :  { %p322_p9 = pnand %p321_p8, %p315_p5 }
  0x17   :  { %325 = shalt.err (!%p322_p9)
}
  0x18   :  { %s356_s22 = smov 256   ;;  %s357_s23 = smov 16  }
  0x19   :  { %34 = dma.hbm_to_vmem [thread:$0]  %s402_s1, 4096, %s29_s20, [#allocation7], %s356_s22, %s356_s22, %s357_s23  }
  0x1a   :  { %346 = dma.done.wait [#allocation4], 384  }
  0x1b   :  { %347 = vsyncadd [#allocation4], 4294966912 }
  0x1c   :  { %348 = dma.done.wait [#allocation7], 4096  }
  0x1d   :  { %349 = vsyncadd [#allocation7], 4294963200  ;;  %v358_v0 = vmov 0.0   ;;  %v93_v1 = vld [vmem:[#allocation6 + $0xf8] sm:$0xff]  ;;  %v92_v2 = vld [vmem:[#allocation6 + $0xf0] sm:$0xff]  ;;  %v200_v36 = vlaneseq }
  0x1e   :  { %164 = vmatprep.mubr.f32.mxu1 %v358_v0  ;;  %158 = vmatprep.mubr.f32.mxu0 %v358_v0  ;;  %v91_v3 = vld [vmem:[#allocation6 + $0xe8] sm:$0xff]  ;;  %v90_v4 = vld [vmem:[#allocation6 + $0xe0] sm:$0xff]  ;;  %v89_v5 = vld [vmem:[#allocation6 + $0xd8] sm:$0xff] }
  0x1f   :  { %246 = vmatprep.subr.mxu1 %v93_v1  ;;  %94 = vmatprep.subr.mxu0 %v93_v1  ;;  %v88_v6 = vld [vmem:[#allocation6 + $0xd0] sm:$0xff]  ;;  %v87_v7 = vld [vmem:[#allocation6 + $0xc8] sm:$0xff]  ;;  %v86_v8 = vld [vmem:[#allocation6 + $0xc0] sm:$0xff]  ;;  %v201_v37 = vshrl.u32 %v200_v36, 7 }
  0x20   :  { %262 = vmatpush1.msra.mxu1 %v92_v2  ;;  %95 = vmatpush1.msra.mxu0 %v92_v2  ;;  %v85_v9 = vld [vmem:[#allocation6 + $0xb8] sm:$0xff]  ;;  %v84_v10 = vld [vmem:[#allocation6 + $0xb0] sm:$0xff]  ;;  %v83_v11 = vld [vmem:[#allocation6 + $0xa8] sm:$0xff] }
  0x21   :  { %247 = vmatprep.subr.mxu1 %v91_v3  ;;  %96 = vmatprep.subr.mxu0 %v91_v3  ;;  %v82_v12 = vld [vmem:[#allocation6 + $0xa0] sm:$0xff]  ;;  %v81_v13 = vld [vmem:[#allocation6 + $0x98] sm:$0xff]  ;;  %v80_v14 = vld [vmem:[#allocation6 + $0x90] sm:$0xff]  ;;  %v202_v38 = vsub.s32 0, %v201_v37  ;;  %v206_v40 = vsub.s32 1, %v201_v37 }
  0x22   :  { %263 = vmatpush1.msra.mxu1 %v90_v4  ;;  %97 = vmatpush1.msra.mxu0 %v90_v4  ;;  %v79_v15 = vld [vmem:[#allocation6 + $0x88] sm:$0xff]  ;;  %v78_v16 = vld [vmem:[#allocation6 + $0x80] sm:$0xff]  ;;  %v77_v17 = vld [vmem:[#allocation6 + $0x78] sm:$0xff] }
  0x23   :  { %248 = vmatprep.subr.mxu1 %v89_v5  ;;  %98 = vmatprep.subr.mxu0 %v89_v5  ;;  %v76_v18 = vld [vmem:[#allocation6 + $0x70] sm:$0xff]  ;;  %v75_v19 = vld [vmem:[#allocation6 + $0x68] sm:$0xff]  ;;  %v74_v20 = vld [vmem:[#allocation6 + $0x60] sm:$0xff] }
  0x24   :  { %264 = vmatpush1.msra.mxu1 %v88_v6  ;;  %99 = vmatpush1.msra.mxu0 %v88_v6  ;;  %v73_v21 = vld [vmem:[#allocation6 + $0x58] sm:$0xff]  ;;  %v72_v22 = vld [vmem:[#allocation6 + $0x50] sm:$0xff]  ;;  %v71_v23 = vld [vmem:[#allocation6 + $0x48] sm:$0xff] }
  0x25   :  { %249 = vmatprep.subr.mxu1 %v87_v7  ;;  %100 = vmatprep.subr.mxu0 %v87_v7  ;;  %v70_v24 = vld [vmem:[#allocation6 + $0x40] sm:$0xff]  ;;  %v69_v25 = vld [vmem:[#allocation6 + $0x38] sm:$0xff]  ;;  %v68_v26 = vld [vmem:[#allocation6 + $0x30] sm:$0xff] }
  0x26   :  { %265 = vmatpush1.msra.mxu1 %v86_v8  ;;  %101 = vmatpush1.msra.mxu0 %v86_v8  ;;  %v67_v27 = vld [vmem:[#allocation6 + $0x28] sm:$0xff]  ;;  %v66_v28 = vld [vmem:[#allocation6 + $0x20] sm:$0xff]  ;;  %v65_v29 = vld [vmem:[#allocation6 + $0x18] sm:$0xff] }
  0x27   :  { %250 = vmatprep.subr.mxu1 %v85_v9  ;;  %102 = vmatprep.subr.mxu0 %v85_v9  ;;  %v64_v30 = vld [vmem:[#allocation6 + $0x10] sm:$0xff]  ;;  %v63_v31 = vld [vmem:[#allocation6 + $0x8] sm:$0xff]  ;;  %v62_v32 = vld [vmem:[#allocation6] sm:$0xff] }
  0x28   :  { %266 = vmatpush1.msra.mxu1 %v84_v10  ;;  %103 = vmatpush1.msra.mxu0 %v84_v10  ;;  %v60_v33 = vld [vmem:[#allocation3 + $0x8] sm:$0xff]  ;;  %v59_v34 = vld [vmem:[#allocation3] sm:$0xff]  ;;  %v61_v35 = vld [vmem:[#allocation3 + $0x10] sm:$0xff] }
  0x29   :  { %251 = vmatprep.subr.mxu1 %v83_v11  ;;  %104 = vmatprep.subr.mxu0 %v83_v11  ;;  %v198_v39 = vld [vmem:[%s403_s2] sm:$0x3]  ;;  %s359_s2 = smov [#allocation8]  }
  0x2a   :  { %267 = vmatpush1.msra.mxu1 %v82_v12  ;;  %105 = vmatpush1.msra.mxu0 %v82_v12  ;;  %v203_v41 = vrot.slane %v198_v39, %v202_v38  ;;  %v207_v42 = vrot.slane %v198_v39, %v206_v40  ;;  %s233_s26 = sshll.u32 %s359_s2, 4  ;;  %s234_s26 = int_to_ptr.vmem [resolvable:$true] %s233_s26 }
  0x2b   :  { %252 = vmatprep.subr.mxu1 %v81_v13  ;;  %106 = vmatprep.subr.mxu0 %v81_v13  ;;  %s326_s27 = scalar_lea.vmem %s234_s26, 768  ;;  %p331_p11 = scmp.lt.s32.totalorder %s234_s26, %s234_s26 }
  0x2c   :  { %268 = vmatpush1.msra.mxu1 %v80_v14  ;;  %107 = vmatpush1.msra.mxu0 %v80_v14  ;;  %p327_p10 = scmp.ne.s32.totalorder %s234_s26, %s326_s27  ;;  %p332_p12 = scmp.lt.s32.totalorder %s326_s27, %s326_s27 }
  0x2d   :  { %253 = vmatprep.subr.mxu1 %v79_v15  ;;  %108 = vmatprep.subr.mxu0 %v79_v15 }
  0x2e   :  { %269 = vmatpush1.msra.mxu1 %v78_v16  ;;  %109 = vmatpush1.msra.mxu0 %v78_v16  ;;  %p333_p13 = por %p332_p12, %p331_p11 }
  0x2f   :  { %254 = vmatprep.subr.mxu1 %v77_v17  ;;  %110 = vmatprep.subr.mxu0 %v77_v17 }
  0x30   :  { %270 = vmatpush1.msra.mxu1 %v76_v18  ;;  %111 = vmatpush1.msra.mxu0 %v76_v18  ;;  %p334_p0 = pnand %p333_p13, %p327_p10 }
  0x31   :  { %255 = vmatprep.subr.mxu1 %v75_v19  ;;  %112 = vmatprep.subr.mxu0 %v75_v19 }
  0x32   :  { %271 = vmatpush1.msra.mxu1 %v74_v20  ;;  %113 = vmatpush1.msra.mxu0 %v74_v20 }
  0x33   :  { %256 = vmatprep.subr.mxu1 %v73_v21  ;;  %114 = vmatprep.subr.mxu0 %v73_v21 }
  0x34   :  { %272 = vmatpush1.msra.mxu1 %v72_v22  ;;  %115 = vmatpush1.msra.mxu0 %v72_v22 }
  0x35   :  { %257 = vmatprep.subr.mxu1 %v71_v23  ;;  %116 = vmatprep.subr.mxu0 %v71_v23 }
  0x36   :  { %273 = vmatpush1.msra.mxu1 %v70_v24  ;;  %117 = vmatpush1.msra.mxu0 %v70_v24 }
  0x37   :  { %258 = vmatprep.subr.mxu1 %v69_v25  ;;  %118 = vmatprep.subr.mxu0 %v69_v25 }
  0x38   :  { %274 = vmatpush1.msra.mxu1 %v68_v26  ;;  %119 = vmatpush1.msra.mxu0 %v68_v26 }
  0x39   :  { %259 = vmatprep.subr.mxu1 %v67_v27  ;;  %120 = vmatprep.subr.mxu0 %v67_v27 }
  0x3a   :  { %275 = vmatpush1.msra.mxu1 %v66_v28  ;;  %121 = vmatpush1.msra.mxu0 %v66_v28 }
  0x3b   :  { %260 = vmatprep.subr.mxu1 %v65_v29  ;;  %122 = vmatprep.subr.mxu0 %v65_v29 }
  0x3c   :  { %276 = vmatpush1.msra.mxu1 %v64_v30  ;;  %123 = vmatpush1.msra.mxu0 %v64_v30 }
  0x3d   :  { %261 = vmatprep.subr.mxu1 %v63_v31  ;;  %124 = vmatprep.subr.mxu0 %v63_v31 }
  0x3e   :  { %277 = vmatpush1.msra.mxu1 %v62_v32  ;;  %125 = vmatpush1.msra.mxu0 %v62_v32 }
  0x3f   :  { %165 = vmatmul.mubr.f32.vlgmr.msra.gmra.mxu1 %v60_v33  ;;  %159 = vmatmul.mubr.f32.vlgmr.msra.gmra.mxu0 %v59_v34 }
  0x40   :  { %170 = vmatprep.mubr.f32.mxu1 %v358_v0 }
  0x43   :  { %171 = vmatmul.mubr.f32.gmra.mxu1 %v61_v35 }
  0xff   :  { %v166_v43 = vpop.f32.mrf.mxu1  ;;  %v160_v44 = vpop.f32.mrf.mxu0 }
 0x100   :  { %v212_v45 = vadd.f32 %v203_v41, %v166_v43  ;;  %v210_v46 = vadd.f32 %v203_v41, %v160_v44 }
 0x101   :  { %v168_v47 = vpop.f32.mrf.mxu1  ;;  %v162_v48 = vpop.f32.mrf.mxu0 }
 0x102   :  { %v218_v49 = vmax.f32 %v212_v45, 0.0  ;;  %v216_v50 = vmax.f32 %v210_v46, 0.0  ;;  %v213_v51 = vadd.f32 %v207_v42, %v168_v47  ;;  %v211_v52 = vadd.f32 %v207_v42, %v162_v48 }
 0x103   :  { %v172_v53 = vpop.f32.mrf.mxu1 }
 0x104   :  { %224 = vst [vmem:[#allocation8 + $0x10] sm:$0xff] %v218_v49  ;;  %222 = vst [vmem:[#allocation8] sm:$0xff] %v216_v50  ;;  %v219_v54 = vmax.f32 %v213_v51, 0.0  ;;  %v217_v55 = vmax.f32 %v211_v52, 0.0  ;;  %v214_v56 = vadd.f32 %v203_v41, %v172_v53 }
 0x105   :  { %v174_v57 = vpop.f32.mrf.mxu1 }
 0x106   :  { %225 = vst [vmem:[#allocation8 + $0x18] sm:$0xff] %v219_v54  ;;  %223 = vst [vmem:[#allocation8 + $0x8] sm:$0xff] %v217_v55  ;;  %v220_v58 = vmax.f32 %v214_v56, 0.0  ;;  %v215_v59 = vadd.f32 %v207_v42, %v174_v57 }
 0x108   :  { %226 = vst [vmem:[#allocation8 + $0x20] sm:$0xff] %v220_v58  ;;  %v221_v60 = vmax.f32 %v215_v59, 0.0 }
 0x10a   :  { %227 = vst [vmem:[#allocation8 + $0x28] sm:$0xff] %v221_v60 }
 0x10b   :  { %337 = shalt.err (!%p334_p0)
}
 0x10c   :  { %239 = dma.vmem_to_hbm [thread:$0]  %s234_s26, 768, %s404_s3, [#allocation5], %s356_s22, %s356_s22, %s357_s23  }
 0x10d   :  { %350 = dma.done.wait [#allocation5], 768  }
 0x10e   :  { %351 = vsyncadd [#allocation5], 4294966528 }
 0x10f   :  { %243 = vsyncpa [#allocation4], 1 }
 0x110   :  { %244 = vsyncpa [#allocation7], 1 }
 0x111   :  { %245 = vsyncpa [#allocation5], 1 }

</bundles_post_ra>
